<compile_context>
chip_gen: v6e
topology: v6e:2x2x1
jax: 0.10.0
libtpu: 0.0.40
codegen_flags: <defaults>
</compile_context>

<pallas_src>
import jax
import jax.numpy as jnp
from jax.experimental import pallas as pl
from jax.experimental.pallas import tpu as pltpu


def _round_up(a, b):
    return ((a + b - 1) // b) * b


def _const_spec(block_shape, index_map):
    """BlockSpec for a constant-index (weight / BN-param) operand.

    Single-buffered (pl.Buffered(1)): its block never changes across the grid,
    so double-buffering only wastes VMEM.  Falls back to a plain spec if this
    JAX version's BlockSpec has no pipeline_mode argument.
    """
    try:
        return pl.BlockSpec(block_shape, index_map, pipeline_mode=pl.Buffered(1))
    except Exception:  # older BlockSpec signatures
        return pl.BlockSpec(block_shape, index_map)


def _vmem_capacity_bytes():
    try:
        cap = getattr(pltpu.get_tpu_info(), "vmem_capacity_bytes", None)
        if cap:
            return int(cap)
    except Exception:
        pass
    return 64 * 1024 * 1024  # conservative per-TensorCore default (v7x)


# ------------------------------ Pallas kernels -------------------------------

def matmul1_stats_kernel(pooled_ref, w1_ref, h_ref, stats_ref):
    # pooled_ref: (tile_n, C)   bf16  (channels lane-dense)
    # w1_ref:     (C, Hid)      bf16
    # h_ref:      (tile_n, Hid) bf16
    # stats_ref:  (1, 2, Hid)   f32   per-tile [sum(h); sum(h*h)] partials
    h = jnp.dot(pooled_ref[...], w1_ref[...],
                preferred_element_type=jnp.float32)            # f32 accumulation
    h_ref[...] = h.astype(h_ref.dtype)
    s = jnp.sum(h, axis=0, keepdims=True)                      # (1, Hid)
    ss = jnp.sum(h * h, axis=0, keepdims=True)                 # (1, Hid)
    stats_ref[...] = jnp.concatenate([s, ss], axis=0)[None]    # (1, 2, Hid)


def bn_relu_proj_kernel(h_ref, scale_ref, shift_ref, w2_ref, o_ref):
    # h_ref:     (tile_n, Hid)     bf16
    # scale_ref: (1, Hid)          f32  = gamma * rsqrt(var + eps)
    # shift_ref: (1, Hid)          f32  = beta  - mu * scale
    # w2_ref:    (Hid, OUT_PAD)    bf16 (zero-padded columns)
    # o_ref:     (tile_n, OUT_PAD) f32
    h = h_ref[...].astype(jnp.float32)
    a = jnp.maximum(h * scale_ref[...] + shift_ref[...], 0.0)          # BN + ReLU
    z = jnp.dot(a.astype(jnp.bfloat16), w2_ref[...],
                preferred_element_type=jnp.float32)                    # (tile_n, OUT_PAD)
    # F.normalize(dim=1): x / max(||x||, 1e-12) == x * rsqrt(max(||x||^2, 1e-24))
    # padded output columns are exactly zero, so they don't affect the norm.
    sumsq = jnp.sum(z * z, axis=1, keepdims=True)
    o_ref[...] = z * jax.lax.rsqrt(jnp.maximum(sumsq, 1e-24))


# --------------------------------- Wrapper ------------------------------------

def projection_forward(x_nchw, w1, b1, gamma, beta, w2, *, max_tile_n=1024):
    """Forward pass of `Projection` (training-mode BatchNorm).

    x_nchw: (N, C, H, W); w1: (C, Hid); b1: (Hid,); gamma/beta: (Hid,);
    w2: (Hid, Out).  Weights are stored (in_features, out_features), i.e.
    y = x @ W (+ b), equivalent to PyTorch's x @ W_pt.T with W = W_pt.T.
    """
    del b1  # exactly cancelled by training-mode BatchNorm's mean subtraction
    N, C, H, W = x_nchw.shape
    hid = w1.shape[1]
    out_dim = w2.shape[1]
    out_pad = _round_up(max(out_dim, 128), 128)

    # ---- AdaptiveAvgPool2d((1,1)) + Flatten: fused XLA reduce ---------------
    # Single streaming read of x in its native NCHW layout (no materialized
    # transpose); result (N, C) is channels-lane-dense, exactly what matmul-1
    # wants.  f32 accumulation, bf16 only for the MXU LHS.
    pooled = jnp.mean(x_nchw.astype(jnp.float32), axis=(2, 3)).astype(jnp.bfloat16)

    # ---- Generation-aware batch tile ----------------------------------------
    vmem_cap = _vmem_capacity_bytes()          # 64 MiB/TC v7x, 128 MiB v5e/v6e
    vmem_limit = min(int(vmem_cap * 0.80), vmem_cap - 8 * 1024 * 1024)
    budget = int(vmem_limit * 0.85)
    # Resident bytes per batch row / per step (weights single-buffered):
    p1_row = 2 * (C * 2) + 2 * (hid * 2)            # pooled bf16 + h bf16, dbl-buf
    p1_const = C * hid * 2 + 2 * (2 * hid * 4)      # W1 + stats partials
    p2_row = 2 * (hid * 2) + 2 * (out_pad * 4)      # h bf16 + z f32, dbl-buf
    p2_const = hid * out_pad * 2 + 2 * (2 * hid * 4)  # W2 + scale/shift
    per_row = max(p1_row, p2_row)
    const = max(p1_const, p2_const)
    tile_cap = max(16, (budget - const) // max(per_row, 1))

    if N >= 256:
        gran = 256          # fill the 256-wide MXU M dim on v6e/v7x
    elif N >= 128:
        gran = 128
    else:
        gran = 16           # bf16 sublane pack
    tile_n = min(int(max_tile_n), int(tile_cap), _round_up(N, gran))
    tile_n = max(gran, (tile_n // gran) * gran)
    n_pad = _round_up(N, tile_n)
    n_tiles = n_pad // tile_n

    if n_pad != N:
        # Zero rows matmul (bias-free) to exactly 0 -> contribute 0 to the BN
        # partial sums; the true divisor N is used when finishing the stats.
        pooled = jnp.pad(pooled, ((0, n_pad - N), (0, 0)))

    w1_bf = w1.astype(jnp.bfloat16)
    w2_bf = jnp.zeros((hid, out_pad), jnp.bfloat16).at[:, :out_dim].set(
        w2.astype(jnp.bfloat16))

    cparams = pltpu.CompilerParams(
        dimension_semantics=("parallel",),        # megacore sharding on v7x
        vmem_limit_bytes=int(vmem_limit),
    )

    # ---- Phase 1: pooled @ W1 + per-tile BN partial statistics --------------
    h, stats = pl.pallas_call(
        matmul1_stats_kernel,
        out_shape=(jax.ShapeDtypeStruct((n_pad, hid), jnp.bfloat16),
                   jax.ShapeDtypeStruct((n_tiles, 2, hid), jnp.float32)),
        grid=(n_tiles,),
        in_specs=[
            pl.BlockSpec((tile_n, C), lambda i: (i, 0)),
            _const_spec((C, hid), lambda i: (0, 0)),
        ],
        out_specs=(
            pl.BlockSpec((tile_n, hid), lambda i: (i, 0)),
            pl.BlockSpec((1, 2, hid), lambda i: (i, 0, 0)),
        ),
        compiler_params=cparams,
    )(pooled, w1_bf)

    # ---- Finish full-batch BN stats from per-tile partials (tiny XLA op) ----
    total = jnp.sum(stats, axis=0)                        # (2, hid) f32
    mu = total[0] / N
    var = jnp.maximum(total[1] / N - mu * mu, 0.0)        # biased, training mode
    inv_std = jax.lax.rsqrt(var + 1e-5)
    g = gamma.astype(jnp.float32)
    scale = (g * inv_std).reshape(1, hid)
    shift = (beta.astype(jnp.float32) - mu * g * inv_std).reshape(1, hid)

    # ---- Phase 2: BN affine + ReLU + second matmul + L2 normalize -----------
    z = pl.pallas_call(
        bn_relu_proj_kernel,
        out_shape=jax.ShapeDtypeStruct((n_pad, out_pad), jnp.float32),
        grid=(n_tiles,),
        in_specs=[
            pl.BlockSpec((tile_n, hid), lambda i: (i, 0)),
            _const_spec((1, hid), lambda i: (0, 0)),
            _const_spec((1, hid), lambda i: (0, 0)),
            _const_spec((hid, out_pad), lambda i: (0, 0)),
        ],
        out_specs=pl.BlockSpec((tile_n, out_pad), lambda i: (i, 0)),
        compiler_params=cparams,
    )(h, scale, shift, w2_bf)

    return z[:N, :out_dim]


def _reference(x, w1, b1, gamma, beta, w2):
    """Pure-JAX f32 reference matching the PyTorch module (training-mode BN)."""
    N, C, H, W = x.shape
    pooled = jnp.mean(x.reshape(N, C, H * W), axis=2)
    h = pooled @ w1 + b1
    mu = jnp.mean(h, axis=0)
    var = jnp.mean(jnp.square(h - mu), axis=0)
    hn = (h - mu) * jax.lax.rsqrt(var + 1e-5) * gamma + beta
    a = jnp.maximum(hn, 0.0)
    z = a @ w2
    nrm = jnp.maximum(jnp.linalg.norm(z, axis=1, keepdims=True), 1e-12)
    return z / nrm


if __name__ == "__main__":
    # Small shapes consistent with the module (input_dim=C, hidden, output=32).
    # N=20 with max_tile_n=16 exercises the multi-tile grid + batch-padding path.
    N, C, H, W = 20, 256, 4, 4
    HIDDEN, OUT = 256, 32

    key = jax.random.PRNGKey(0)
    kx, kw1, kb1, kg, kb, kw2 = jax.random.split(key, 6)

    x = jax.random.normal(kx, (N, C, H, W), dtype=jnp.float32)
    w1 = jax.random.normal(kw1, (C, HIDDEN), dtype=jnp.float32) * (1.0 / jnp.sqrt(C))
    b1 = jax.random.normal(kb1, (HIDDEN,), dtype=jnp.float32) * 0.01
    gamma = 1.0 + 0.1 * jax.random.normal(kg, (HIDDEN,), dtype=jnp.float32)
    beta = 0.1 * jax.random.normal(kb, (HIDDEN,), dtype=jnp.float32)
    w2 = jax.random.normal(kw2, (HIDDEN, OUT), dtype=jnp.float32) * (1.0 / jnp.sqrt(HIDDEN))

    fwd = jax.jit(lambda *a: projection_forward(*a, max_tile_n=16))
    out = jax.block_until_ready(fwd(x, w1, b1, gamma, beta, w2))

    assert out.shape == (N, OUT)
    # Rows are unit-norm after F.normalize.
    row_norms = jnp.linalg.norm(out, axis=1)
    assert bool(jnp.all(jnp.abs(row_norms - 1.0) < 1e-3)), row_norms
    # Matches the f32 pure-JAX reference (bf16 MXU operands -> loose tolerance).
    ref = _reference(x, w1, b1, gamma, beta, w2)
    max_err = float(jnp.max(jnp.abs(out - ref)))
    assert max_err < 5e-2, max_err

    print("KERNEL_OK")
</pallas_src>

<mosaic_0001>
module attributes {stable_mosaic.version = 11 : i64} {
  func.func @matmul1_stats_kernel(%arg0: i32, %arg1: memref<16x256xbf16, #tpu.memory_space<vmem>>, %arg2: memref<256x256xbf16, #tpu.memory_space<vmem>>, %arg3: memref<16x256xbf16, #tpu.memory_space<vmem>>, %arg4: memref<1x2x256xf32, #tpu.memory_space<vmem>>) attributes {dimension_semantics = [#tpu.dimension_semantics<parallel>], iteration_bounds = array<i64: 2>, scalar_prefetch = 0 : i64, scratch_operands = 0 : i64, tpu.core_type = #tpu.core_type<tc>, window_params = [{transform_indices = @transform_0, window_bounds = array<i64: 16, 256>}, {pipeline_mode = #tpu.pipeline_mode<synchronous>, transform_indices = @transform_1, window_bounds = array<i64: 256, 256>}, {transform_indices = @transform_2, window_bounds = array<i64: 16, 256>}, {transform_indices = @transform_3, window_bounds = array<i64: 1, 2, 256>}]} {
    %c0 = arith.constant 0 : index
    %c0_0 = arith.constant 0 : index
    %0 = vector.load %arg1[%c0, %c0_0] : memref<16x256xbf16, #tpu.memory_space<vmem>>, vector<16x256xbf16>
    %c0_1 = arith.constant 0 : index
    %c0_2 = arith.constant 0 : index
    %1 = vector.load %arg2[%c0_1, %c0_2] : memref<256x256xbf16, #tpu.memory_space<vmem>>, vector<256x256xbf16>
    %cst = arith.constant dense<0.000000e+00> : vector<16x256xf32>
    %2 = tpu.matmul %0, %1, %cst {dimension_numbers = #tpu.dot_dimension_numbers<[1], [0], [0], [1], [0, 0, 1, 1], [], []>} : vector<16x256xbf16>, vector<256x256xbf16>, vector<16x256xf32> -> vector<16x256xf32>
    %3 = arith.truncf %2 : vector<16x256xf32> to vector<16x256xbf16>
    %c0_3 = arith.constant 0 : index
    %c0_4 = arith.constant 0 : index
    %4 = vector.load %arg3[%c0_3, %c0_4] : memref<16x256xbf16, #tpu.memory_space<vmem>>, vector<16x256xbf16>
    tpu.vector_store %arg3[%c0_3, %c0_4], %3 {strides = array<i32>} : memref<16x256xbf16, #tpu.memory_space<vmem>>, vector<16x256xbf16>,
    %cst_5 = arith.constant dense<0.000000e+00> : vector<256xf32>
    %5 = vector.multi_reduction <add>, %2, %cst_5 [0] : vector<16x256xf32> to vector<256xf32>
    %6 = vector.shape_cast %5 : vector<256xf32> to vector<1x256xf32>
    %7 = arith.mulf %2, %2 : vector<16x256xf32>
    %cst_6 = arith.constant dense<0.000000e+00> : vector<256xf32>
    %8 = vector.multi_reduction <add>, %7, %cst_6 [0] : vector<16x256xf32> to vector<256xf32>
    %9 = vector.shape_cast %8 : vector<256xf32> to vector<1x256xf32>
    %10 = tpu.concatenate %6, %9 in 0 : vector<1x256xf32>, vector<1x256xf32> -> vector<2x256xf32>
    %11 = vector.shape_cast %10 : vector<2x256xf32> to vector<1x2x256xf32>
    %c0_7 = arith.constant 0 : index
    %c0_8 = arith.constant 0 : index
    %c0_9 = arith.constant 0 : index
    %12 = vector.load %arg4[%c0_7, %c0_8, %c0_9] : memref<1x2x256xf32, #tpu.memory_space<vmem>>, vector<1x2x256xf32>
    tpu.vector_store %arg4[%c0_7, %c0_8, %c0_9], %11 {strides = array<i32>} : memref<1x2x256xf32, #tpu.memory_space<vmem>>, vector<1x2x256xf32>,
    return
  }
  func.func @transform_0(%arg0: i32) -> (i32, i32) {
    %c0_i32 = arith.constant 0 : i32
    %c0_i32_0 = arith.constant 0 : i32
    return %arg0, %c0_i32 : i32, i32
  }
  func.func @transform_1(%arg0: i32) -> (i32, i32) {
    %c0_i32 = arith.constant 0 : i32
    %c0_i32_0 = arith.constant 0 : i32
    %c0_i32_1 = arith.constant 0 : i32
    return %c0_i32, %c0_i32_0 : i32, i32
  }
  func.func @transform_2(%arg0: i32) -> (i32, i32) {
    %c0_i32 = arith.constant 0 : i32
    %c0_i32_0 = arith.constant 0 : i32
    return %arg0, %c0_i32 : i32, i32
  }
  func.func @transform_3(%arg0: i32) -> (i32, i32, i32) {
    %c0_i32 = arith.constant 0 : i32
    %c0_i32_0 = arith.constant 0 : i32
    %c0_i32_1 = arith.constant 0 : i32
    return %arg0, %c0_i32, %c0_i32_0 : i32, i32, i32
  }
}

module attributes {stable_mosaic.version = 11 : i64} {
  func.func @bn_relu_proj_kernel(%arg0: i32, %arg1: memref<16x256xbf16, #tpu.memory_space<vmem>>, %arg2: memref<1x256xf32, #tpu.memory_space<vmem>>, %arg3: memref<1x256xf32, #tpu.memory_space<vmem>>, %arg4: memref<256x128xbf16, #tpu.memory_space<vmem>>, %arg5: memref<16x128xf32, #tpu.memory_space<vmem>>) attributes {dimension_semantics = [#tpu.dimension_semantics<parallel>], iteration_bounds = array<i64: 2>, scalar_prefetch = 0 : i64, scratch_operands = 0 : i64, tpu.core_type = #tpu.core_type<tc>, window_params = [{transform_indices = @transform_0, window_bounds = array<i64: 16, 256>}, {pipeline_mode = #tpu.pipeline_mode<synchronous>, transform_indices = @transform_1, window_bounds = array<i64: 1, 256>}, {pipeline_mode = #tpu.pipeline_mode<synchronous>, transform_indices = @transform_2, window_bounds = array<i64: 1, 256>}, {pipeline_mode = #tpu.pipeline_mode<synchronous>, transform_indices = @transform_3, window_bounds = array<i64: 256, 128>}, {transform_indices = @transform_4, window_bounds = array<i64: 16, 128>}]} {
    %c0 = arith.constant 0 : index
    %c0_0 = arith.constant 0 : index
    %0 = vector.load %arg1[%c0, %c0_0] : memref<16x256xbf16, #tpu.memory_space<vmem>>, vector<16x256xbf16>
    %1 = arith.extf %0 : vector<16x256xbf16> to vector<16x256xf32>
    %c0_1 = arith.constant 0 : index
    %c0_2 = arith.constant 0 : index
    %2 = vector.load %arg2[%c0_1, %c0_2] : memref<1x256xf32, #tpu.memory_space<vmem>>, vector<1x256xf32>
    %3 = vector.broadcast %2 : vector<1x256xf32> to vector<16x256xf32>
    %4 = arith.mulf %1, %3 : vector<16x256xf32>
    %c0_3 = arith.constant 0 : index
    %c0_4 = arith.constant 0 : index
    %5 = vector.load %arg3[%c0_3, %c0_4] : memref<1x256xf32, #tpu.memory_space<vmem>>, vector<1x256xf32>
    %6 = vector.broadcast %5 : vector<1x256xf32> to vector<16x256xf32>
    %7 = arith.addf %4, %6 : vector<16x256xf32>
    %cst = arith.constant 0.000000e+00 : f32
    %8 = vector.broadcast %cst : f32 to vector<16x256xf32>
    %9 = arith.maximumf %7, %8 : vector<16x256xf32>
    %10 = arith.truncf %9 : vector<16x256xf32> to vector<16x256xbf16>
    %c0_5 = arith.constant 0 : index
    %c0_6 = arith.constant 0 : index
    %11 = vector.load %arg4[%c0_5, %c0_6] : memref<256x128xbf16, #tpu.memory_space<vmem>>, vector<256x128xbf16>
    %cst_7 = arith.constant dense<0.000000e+00> : vector<16x128xf32>
    %12 = tpu.matmul %10, %11, %cst_7 {dimension_numbers = #tpu.dot_dimension_numbers<[1], [0], [0], [1], [0, 0, 1, 1], [], []>} : vector<16x256xbf16>, vector<256x128xbf16>, vector<16x128xf32> -> vector<16x128xf32>
    %13 = arith.mulf %12, %12 : vector<16x128xf32>
    %cst_8 = arith.constant dense<0.000000e+00> : vector<16xf32>
    %14 = vector.multi_reduction <add>, %13, %cst_8 [1] : vector<16x128xf32> to vector<16xf32>
    %15 = vector.shape_cast %14 : vector<16xf32> to vector<16x1xf32>
    %cst_9 = arith.constant 1.000000e-24 : f32
    %16 = vector.broadcast %cst_9 : f32 to vector<16x1xf32>
    %17 = arith.maximumf %15, %16 : vector<16x1xf32>
    %18 = math.rsqrt %17 : vector<16x1xf32>
    %19 = vector.broadcast %18 : vector<16x1xf32> to vector<16x128xf32>
    %20 = arith.mulf %12, %19 : vector<16x128xf32>
    %c0_10 = arith.constant 0 : index
    %c0_11 = arith.constant 0 : index
    %21 = vector.load %arg5[%c0_10, %c0_11] : memref<16x128xf32, #tpu.memory_space<vmem>>, vector<16x128xf32>
    tpu.vector_store %arg5[%c0_10, %c0_11], %20 {strides = array<i32>} : memref<16x128xf32, #tpu.memory_space<vmem>>, vector<16x128xf32>,
    return
  }
  func.func @transform_0(%arg0: i32) -> (i32, i32) {
    %c0_i32 = arith.constant 0 : i32
    %c0_i32_0 = arith.constant 0 : i32
    return %arg0, %c0_i32 : i32, i32
  }
  func.func @transform_1(%arg0: i32) -> (i32, i32) {
    %c0_i32 = arith.constant 0 : i32
    %c0_i32_0 = arith.constant 0 : i32
    %c0_i32_1 = arith.constant 0 : i32
    return %c0_i32, %c0_i32_0 : i32, i32
  }
  func.func @transform_2(%arg0: i32) -> (i32, i32) {
    %c0_i32 = arith.constant 0 : i32
    %c0_i32_0 = arith.constant 0 : i32
    %c0_i32_1 = arith.constant 0 : i32
    return %c0_i32, %c0_i32_0 : i32, i32
  }
  func.func @transform_3(%arg0: i32) -> (i32, i32) {
    %c0_i32 = arith.constant 0 : i32
    %c0_i32_0 = arith.constant 0 : i32
    %c0_i32_1 = arith.constant 0 : i32
    return %c0_i32, %c0_i32_0 : i32, i32
  }
  func.func @transform_4(%arg0: i32) -> (i32, i32) {
    %c0_i32 = arith.constant 0 : i32
    %c0_i32_0 = arith.constant 0 : i32
    return %arg0, %c0_i32 : i32, i32
  }
}

</mosaic_0001>

<bundles_post_ra>
// kernel: _lambda_.2
= control target key start
LH: loop header
LB: loop body
LE: loop exit
PB: predicated region body
PF: predicated region fallthrough
CT: control target
= control target key end

     0   :  { %s735_s12 = smov 0   ;;  %s867_s0 = inlined_call_operand.vmem [shape: bf16[32,256], index: 0, kind: input, shape index: {}]   ;;  %s868_s1 = inlined_call_operand.vmem [shape: bf16[256,256], index: 1, kind: input, shape index: {}]   ;;  %s869_s2 = inlined_call_operand.vmem [shape: bf16[32,256], index: 2, kind: output, shape index: {0}]   ;;  %s870_s3 = inlined_call_operand.vmem [shape: f32[2,2,256], index: 3, kind: output, shape index: {1}]  }
   0x1 LB: > { %s741_s13 = sadd.s32 4294967295, %s713_s12   ;;  %p595_p0 = scmp.ge.s32.totalorder %s713_s12, 1  ;;  %s713_s12 = sphi %s735_s12, %s14_s12  }
   0x2   : > { %p142_p1 = scmp.lt.s32.totalorder %s713_s12, 3 }
   0x4   : > { %p143_p2 = pnand %p595_p0, %p142_p1 }
   0x5   : > { %s596_s24 = sshll.u32 (!%p143_p2), %s741_s13, 1  ;;  %p187_p4 = scmp.lt.s32.totalorder (!%p143_p2), %s741_s13, 1 }
   0x6   : > { %146 = sbr.rel (%p143_p2) target bundleno = 296 (0x128), region = 28  ;;  %p174_p3 = scmp.lt.s32.totalorder (!%p143_p2), %s596_s24, 3 }
   0xb   : > { %v656_v0 = vld [vmem:[%s868_s1 + $0x74] ss:$8 sps:$4 sm:$0xff]   ;;  %v658_v1 = vld [vmem:[%s868_s1 + $0x70] ss:$8 sps:$4 sm:$0xff]   ;;  %v659_v2 = vld [vmem:[%s868_s1 + $0x64] ss:$8 sps:$4 sm:$0xff]  }
   0xc   : > { %396 = vmatprep.subr.bf16.mxu0 %v656_v0  ;;  %v661_v3 = vld [vmem:[%s868_s1 + $0x60] ss:$8 sps:$4 sm:$0xff]   ;;  %v662_v4 = vld [vmem:[%s868_s1 + $0x54] ss:$8 sps:$4 sm:$0xff]   ;;  %v664_v5 = vld [vmem:[%s868_s1 + $0x50] ss:$8 sps:$4 sm:$0xff]  }
   0xd   : > { %397 = vmatpush1.bf16.msra.mxu0 %v658_v1  ;;  %v665_v6 = vld [vmem:[%s868_s1 + $0x44] ss:$8 sps:$4 sm:$0xff]   ;;  %v667_v7 = vld [vmem:[%s868_s1 + $0x40] ss:$8 sps:$4 sm:$0xff]   ;;  %v668_v8 = vld [vmem:[%s868_s1 + $0x34] ss:$8 sps:$4 sm:$0xff]  }
   0xe   : > { %398 = vmatprep.subr.bf16.mxu0 %v659_v2  ;;  %s872_s24 = smov (!%p174_p3, %s596_s24), 3  ;;  %v670_v9 = vld [vmem:[%s868_s1 + $0x30] ss:$8 sps:$4 sm:$0xff]   ;;  %v671_v10 = vld [vmem:[%s868_s1 + $0x24] ss:$8 sps:$4 sm:$0xff]   ;;  %s874_s13 = smov (!%p187_p4, %s741_s13), 1 }
   0xf   : > { %s643_s10 = sshll.u32 %s872_s24, 3  ;;  %v673_v11 = vld [vmem:[%s868_s1 + $0x20] ss:$8 sps:$4 sm:$0xff]   ;;  %v674_v12 = vld [vmem:[%s868_s1 + $0x14] ss:$8 sps:$4 sm:$0xff]   ;;  %vm485_vm0 = vcmask 1040384  }
  0x10   : > { %s790_s17 = scalar_lea.vmem %s867_s0, %s643_s10  ;;  %v676_v14 = vld [vmem:[%s868_s1 + $0x10] ss:$8 sps:$4 sm:$0xff]   ;;  %v677_v15 = vld [vmem:[%s868_s1 + $0x4] ss:$8 sps:$4 sm:$0xff]   ;;  %v679_v16 = vld [vmem:[%s868_s1] ss:$8 sps:$4 sm:$0xff]   ;;  %s185_s15 = scalar_lea.vmem %s869_s2, %s643_s10 }
  0x11   : > { %399 = vmatpush1.bf16.msra.mxu0 %v661_v3  ;;  %v706_v13 = vld [vmem:[%s790_s17 + $0x4] ss:$8 sps:$4 sm:$0xff]   ;;  %v680_v17 = vld [vmem:[%s868_s1 + $0xf4] ss:$8 sps:$4 sm:$0xff]   ;;  %v682_v18 = vld [vmem:[%s868_s1 + $0xf0] ss:$8 sps:$4 sm:$0xff]  }
  0x12   : > { %400 = vmatprep.subr.bf16.mxu0 %v662_v4  ;;  %428 = vmatprep.mubr.bf16.mxu0 %v706_v13  ;;  %v683_v19 = vld [vmem:[%s868_s1 + $0xe4] ss:$8 sps:$4 sm:$0xff]   ;;  %v685_v20 = vld [vmem:[%s868_s1 + $0xe0] ss:$8 sps:$4 sm:$0xff]   ;;  %v686_v21 = vld [vmem:[%s868_s1 + $0xd4] ss:$8 sps:$4 sm:$0xff]  }
  0x13   : > { %v688_v22 = vld [vmem:[%s868_s1 + $0xd0] ss:$8 sps:$4 sm:$0xff]   ;;  %v689_v23 = vld [vmem:[%s868_s1 + $0xc4] ss:$8 sps:$4 sm:$0xff]   ;;  %v691_v24 = vld [vmem:[%s868_s1 + $0xc0] ss:$8 sps:$4 sm:$0xff]  }
  0x14   : > { %v692_v25 = vld [vmem:[%s868_s1 + $0xb4] ss:$8 sps:$4 sm:$0xff]   ;;  %v694_v26 = vld [vmem:[%s868_s1 + $0xb0] ss:$8 sps:$4 sm:$0xff]   ;;  %v695_v27 = vld [vmem:[%s868_s1 + $0xa4] ss:$8 sps:$4 sm:$0xff]  }
  0x15   : > { %401 = vmatpush1.bf16.msra.mxu0 %v664_v5  ;;  %v697_v28 = vld [vmem:[%s868_s1 + $0xa0] ss:$8 sps:$4 sm:$0xff]   ;;  %v698_v29 = vld [vmem:[%s868_s1 + $0x94] ss:$8 sps:$4 sm:$0xff]   ;;  %v700_v30 = vld [vmem:[%s868_s1 + $0x90] ss:$8 sps:$4 sm:$0xff]  }
  0x16   : > { %402 = vmatprep.subr.bf16.mxu0 %v665_v6  ;;  %v701_v31 = vld [vmem:[%s868_s1 + $0x84] ss:$8 sps:$4 sm:$0xff]   ;;  %v703_v32 = vld [vmem:[%s868_s1 + $0x80] ss:$8 sps:$4 sm:$0xff]   ;;  %s645_s24 = sshll.u32 %s874_s13, 2 }
  0x17   : > { %v704_v33 = vld [vmem:[%s790_s17] ss:$8 sps:$4 sm:$0xff]   ;;  %s191_s16 = scalar_lea.vmem %s870_s3, %s645_s24 }
  0x19   : > { %403 = vmatpush1.bf16.msra.mxu0 %v667_v7 }
  0x1a   : > { %404 = vmatprep.subr.bf16.mxu0 %v668_v8 }
  0x1d   : > { %405 = vmatpush1.bf16.msra.mxu0 %v670_v9 }
  0x1e   : > { %406 = vmatprep.subr.bf16.mxu0 %v671_v10 }
  0x21   : > { %407 = vmatpush1.bf16.msra.mxu0 %v673_v11 }
  0x22   : > { %408 = vmatprep.subr.bf16.mxu0 %v674_v12 }
  0x25   : > { %409 = vmatpush1.bf16.msra.mxu0 %v676_v14 }
  0x26   : > { %410 = vmatprep.subr.bf16.mxu0 %v677_v15 }
  0x29   : > { %411 = vmatpush1.bf16.msra.mxu0 %v679_v16 }
  0x2a   : > { %412 = vmatprep.subr.bf16.mxu0 %v680_v17 }
  0x2d   : > { %413 = vmatpush2.bf16.msra.mxu0 %v682_v18 }
  0x2e   : > { %414 = vmatprep.subr.bf16.mxu0 %v683_v19 }
  0x31   : > { %415 = vmatpush2.bf16.msra.mxu0 %v685_v20 }
  0x32   : > { %416 = vmatprep.subr.bf16.mxu0 %v686_v21 }
  0x35   : > { %417 = vmatpush2.bf16.msra.mxu0 %v688_v22 }
  0x36   : > { %418 = vmatprep.subr.bf16.mxu0 %v689_v23 }
  0x39   : > { %419 = vmatpush2.bf16.msra.mxu0 %v691_v24 }
  0x3a   : > { %420 = vmatprep.subr.bf16.mxu0 %v692_v25 }
  0x3d   : > { %421 = vmatpush2.bf16.msra.mxu0 %v694_v26 }
  0x3e   : > { %422 = vmatprep.subr.bf16.mxu0 %v695_v27 }
  0x41   : > { %423 = vmatpush2.bf16.msra.mxu0 %v697_v28 }
  0x42   : > { %424 = vmatprep.subr.bf16.mxu0 %v698_v29 }
  0x45   : > { %425 = vmatpush2.bf16.msra.mxu0 %v700_v30 }
  0x46   : > { %426 = vmatprep.subr.bf16.mxu0 %v701_v31 }
  0x49   : > { %427 = vmatpush2.bf16.msra.mxu0 %v703_v32 }
  0x4c   : > { %429 = vmatmul.mubr.bf16.vlgmr.msra.gmra.mxu0 %v704_v33 }
 0x10c   : > { %v430_v34 = vpop.f32.mrf.mxu0 }
 0x10d   : > { %v467_v38 = vmul.f32 %v430_v34, %v430_v34 }
 0x10e   : > { %v432_v35 = vpop.f32.mrf.mxu0 }
 0x10f   : > { %v646_v36 = vpack.c.bf16 %v432_v35, %v430_v34  ;;  %v468_v46 = vmul.f32 %v432_v35, %v432_v35 }
 0x110   : > { %v434_v37 = vpop.f32.mrf.mxu0 }
 0x111   : > { %451 = vst [vmem:[%s185_s15] sm:$0xff] %v646_v36  ;;  %v453_v39 = vadd.f32 %v434_v37, %v430_v34  ;;  %v469_v40 = vmul.f32 %v434_v37, %v434_v37 }
 0x112   : > { %v436_v41 = vpop.f32.mrf.mxu0 }
 0x113   : > { %v454_v42 = vrot.slane %v453_v39, 4  ;;  %v471_v43 = vadd.f32 %v469_v40, %v467_v38  ;;  %v647_v44 = vpack.c.bf16 %v436_v41, %v434_v37  ;;  %v460_v45 = vadd.f32 %v436_v41, %v432_v35 }
 0x114   : > { %v470_v47 = vmul.f32 %v436_v41, %v436_v41 }
 0x115   : > { %v455_v48 = vadd.f32 %v454_v42, %v453_v39  ;;  %v472_v49 = vrot.slane %v471_v43, 4  ;;  %452 = vst [vmem:[%s185_s15 + $0x8] sm:$0xff] %v647_v44  ;;  %v461_v50 = vrot.slane %v460_v45, 4 }
 0x116   : > { %v478_v51 = vadd.f32 %v470_v47, %v468_v46 }
 0x117   : > { %v456_v52 = vrot.slane %v455_v48, 2  ;;  %v473_v53 = vadd.f32 %v472_v49, %v471_v43  ;;  %v462_v54 = vadd.f32 %v461_v50, %v460_v45 }
 0x118   : > { %v479_v55 = vrot.slane %v478_v51, 4 }
 0x119   : > { %v474_v56 = vrot.slane %v473_v53, 2  ;;  %v463_v57 = vrot.slane %v462_v54, 2  ;;  %v457_v58 = vadd.f32 %v456_v52, %v455_v48 }
 0x11a   : > { %v480_v59 = vadd.f32 %v479_v55, %v478_v51 }
 0x11b   : > { %v475_v60 = vadd.f32 %v474_v56, %v473_v53  ;;  %v464_v61 = vadd.f32 %v463_v57, %v462_v54  ;;  %v458_v0 = vrot.slane %v457_v58, 1 }
 0x11c   : > { %v481_v62 = vrot.slane %v480_v59, 2 }
 0x11d   : > { %v476_v63 = vrot.slane %v475_v60, 1  ;;  %v465_v1 = vrot.slane %v464_v61, 1  ;;  %v459_v5 = vadd.f32 %v458_v0, %v457_v58 }
 0x11e   : > { %v482_v2 = vadd.f32 %v481_v62, %v480_v59 }
 0x11f   : > { %v477_v3 = vadd.f32 %v476_v63, %v475_v60  ;;  %v466_v6 = vadd.f32 %v465_v1, %v464_v61 }
 0x120   : > { %v483_v4 = vrot.slane %v482_v2, 1 }
 0x121   : > { %v486_v8 = vsel %vm485_vm0, %v459_v5, %v477_v3 }
 0x122   : > { %v484_v7 = vadd.f32 %v483_v4, %v482_v2 }
 0x124   : > { %v487_v9 = vsel %vm485_vm0, %v466_v6, %v484_v7 }
 0x125   : > { %v490_v10 = vcombine.low %v486_v8, %v487_v9 }
 0x127   : > { %640 = vst.sshfl [vmem:[%s191_s16] sm:$0x33 pattern:$0x76325410] %v490_v10 }
 0x128 PF: > { %s14_s12 = sadd.s32 1, %s713_s12  }
 0x129   : > { %p11_p5 = scmp.ge.s32.totalorder %s14_s12, 4  }
 0x12b   :  { %13 = sbr.rel (!%p11_p5) target bundleno = 1 (0x1), region = 70 }

// kernel: _lambda_.3
= control target key start
LH: loop header
LB: loop body
LE: loop exit
PB: predicated region body
PF: predicated region fallthrough
CT: control target
= control target key end

     0   :  { %s600_s15 = smov 0   ;;  %s678_s0 = inlined_call_operand.vmem [shape: bf16[32,256], index: 0, kind: input, shape index: {}]   ;;  %s679_s1 = inlined_call_operand.vmem [shape: f32[1,256], index: 1, kind: input, shape index: {}]   ;;  %s680_s2 = inlined_call_operand.vmem [shape: f32[1,256], index: 2, kind: input, shape index: {}]   ;;  %s681_s3 = inlined_call_operand.vmem [shape: bf16[256,128], index: 3, kind: input, shape index: {}]   ;;  %s682_s4 = inlined_call_operand.vmem [shape: f32[32,128], index: 4, kind: output, shape index: {}]  }
   0x1 LB: > { %s488_s16 = sadd.s32 4294967295, %s573_s15   ;;  %p492_p0 = scmp.ge.s32.totalorder %s573_s15, 1  ;;  %s573_s15 = sphi %s600_s15, %s14_s15  }
   0x2   : > { %p164_p1 = scmp.lt.s32.totalorder %s573_s15, 3 }
   0x4   : > { %p165_p2 = pnand %p492_p0, %p164_p1 }
   0x5   : > { %s493_s19 = sshll.u32 (!%p165_p2), %s488_s16, 1 }
   0x6   : > { %168 = sbr.rel (%p165_p2) target bundleno = 404 (0x194), region = 36  ;;  %p192_p3 = scmp.lt.s32.totalorder (!%p165_p2), %s493_s19, 3 }
   0xb   : > { %v547_v0 = vld [vmem:[%s681_s3 + $0x78] sm:$0xff]   ;;  %v549_v2 = vld [vmem:[%s681_s3 + $0x70] sm:$0xff]   ;;  %v551_v4 = vld [vmem:[%s681_s3 + $0x68] sm:$0xff]   ;;  %v213_v5 = vlaneseq  ;;  %s684_s19 = smov (!%p192_p3, %s493_s19), 3 }
   0xc   : > { %v548_v1 = vld [vmem:[%s681_s3 + $0x38] sm:$0xff]   ;;  %517 = vmatprep.subr.bf16.mxu0 %v547_v0  ;;  %v550_v3 = vld [vmem:[%s681_s3 + $0x30] sm:$0xff]   ;;  %v552_v6 = vld [vmem:[%s681_s3 + $0x28] sm:$0xff]   ;;  %s516_s6 = sshll.u32 %s684_s19, 3 }
   0xd   : > { %518 = vmatpush3.bf16.msra.mxu0 %v548_v1  ;;  %v553_v7 = vld [vmem:[%s681_s3 + $0x60] sm:$0xff]   ;;  %v214_v8 = vshrl.u32 %v213_v5, 7  ;;  %v555_v10 = vld [vmem:[%s681_s3 + $0x58] sm:$0xff]   ;;  %s196_s13 = scalar_lea.vmem %s678_s0, %s516_s6  ;;  %v557_v14 = vld [vmem:[%s681_s3 + $0x50] sm:$0xff]   ;;  %s202_s11 = scalar_lea.vmem %s682_s4, %s516_s6 }
   0xe   : > { %519 = vmatprep.subr.bf16.mxu0 %v549_v2  ;;  %v554_v9 = vld [vmem:[%s681_s3 + $0x20] sm:$0xff]   ;;  %v556_v12 = vld [vmem:[%s681_s3 + $0x18] sm:$0xff]   ;;  %v206_v16 = vld [vmem:[%s196_s13 + $0x8] sm:$0xff] }
   0xf   : > { %v215_v11 = vsub.s32 0, %v214_v8  ;;  %v219_v13 = vsub.s32 1, %v214_v8  ;;  %v205_v15 = vld [vmem:[%s196_s13] sm:$0xff]  ;;  %v209_v20 = vunpack.c.l.bf16 %v206_v16  ;;  %v210_v21 = vunpack.c.h.bf16 %v206_v16  ;;  %v558_v27 = vld [vmem:[%s681_s3 + $0x10] sm:$0xff]   ;;  %v559_v28 = vld [vmem:[%s681_s3 + $0x48] sm:$0xff]  }
  0x10   : > { %v211_v17 = vld [vmem:[%s679_s1] sm:$0x3]  ;;  %v207_v18 = vunpack.c.l.bf16 %v205_v15  ;;  %v208_v19 = vunpack.c.h.bf16 %v205_v15  ;;  %v560_v37 = vld [vmem:[%s681_s3 + $0x8] sm:$0xff]  }
  0x11   : > { %520 = vmatpush3.bf16.msra.mxu0 %v550_v3  ;;  %v227_v22 = vld [vmem:[%s680_s2] sm:$0x3]  ;;  %v216_v23 = vrot.slane %v211_v17, %v215_v11  ;;  %v220_v24 = vrot.slane %v211_v17, %v219_v13 }
  0x12   : > { %521 = vmatprep.subr.bf16.mxu0 %v551_v4  ;;  %v232_v25 = vrot.slane %v227_v22, %v215_v11  ;;  %v236_v26 = vrot.slane %v227_v22, %v219_v13  ;;  %v561_v38 = vld [vmem:[%s681_s3 + $0x40] sm:$0xff]  }
  0x13   : > { %v224_v29 = vmul.f32 %v220_v24, %v208_v19  ;;  %v226_v30 = vmul.f32 %v220_v24, %v210_v21  ;;  %v223_v31 = vmul.f32 %v216_v23, %v207_v18  ;;  %v225_v32 = vmul.f32 %v216_v23, %v209_v20  ;;  %v562_v44 = vld [vmem:[%s681_s3] sm:$0xff]  }
  0x15   : > { %522 = vmatpush3.bf16.msra.mxu0 %v552_v6  ;;  %v240_v33 = vadd.f32 %v236_v26, %v224_v29  ;;  %v242_v34 = vadd.f32 %v236_v26, %v226_v30  ;;  %v239_v35 = vadd.f32 %v232_v25, %v223_v31  ;;  %v241_v36 = vadd.f32 %v232_v25, %v225_v32 }
  0x16   : > { %523 = vmatprep.subr.bf16.mxu0 %v553_v7 }
  0x17   : > { %v244_v39 = vmax.f32 %v240_v33, 0.0  ;;  %v246_v40 = vmax.f32 %v242_v34, 0.0  ;;  %v243_v42 = vmax.f32 %v239_v35, 0.0  ;;  %v245_v43 = vmax.f32 %v241_v36, 0.0 }
  0x19   : > { %524 = vmatpush3.bf16.msra.mxu0 %v554_v9  ;;  %v248_v41 = vpack.c.bf16 %v246_v40, %v244_v39  ;;  %v247_v45 = vpack.c.bf16 %v245_v43, %v243_v42 }
  0x1a   : > { %525 = vmatprep.subr.bf16.mxu0 %v555_v10 }
  0x1b   : > { %409 = vmatprep.mubr.bf16.mxu0 %v248_v41 }
  0x1d   : > { %526 = vmatpush3.bf16.msra.mxu0 %v556_v12 }
  0x1e   : > { %527 = vmatprep.subr.bf16.mxu0 %v557_v14 }
  0x21   : > { %528 = vmatpush3.bf16.msra.mxu0 %v558_v27 }
  0x22   : > { %529 = vmatprep.subr.bf16.mxu0 %v559_v28 }
  0x25   : > { %530 = vmatpush3.bf16.msra.mxu0 %v560_v37 }
  0x26   : > { %531 = vmatprep.subr.bf16.mxu0 %v561_v38 }
  0x29   : > { %532 = vmatpush3.bf16.msra.mxu0 %v562_v44 }
  0x2c   : > { %410 = vmatmul.mubr.bf16.vlgmr.msra.gmra.mxu0 %v247_v45 }
  0xec   : > { %v533_v46 = vpop.f32.mrf.mxu0 }
  0xee   : > { %v534_v47 = vpop.f32.mrf.mxu0 }
  0xef   : > { %v535_v48 = vadd.f32 %v534_v47, %v533_v46 }
  0xf0   : > { %v536_v49 = vpop.f32.mrf.mxu0 }
  0xf1   : > { %v418_v50 = vmul.f32 %v535_v48, %v535_v48 }
  0xf2   : > { %v537_v51 = vpop.f32.mrf.mxu0 }
  0xf3   : > { %v538_v52 = vadd.f32 %v537_v51, %v536_v49  ;;  %420 = vadd.xlane.f32.xlu0 %v418_v50 }
  0xf5   : > { %v419_v53 = vmul.f32 %v538_v52, %v538_v52 }
  0xf7   : > { %422 = vadd.xlane.f32.xlu0 %v419_v53 }
 0x17c   : > { %v421_v54 = vpop.xlane.xlu0 %420 }
 0x17d   : > { %v424_v55 = vmax.f32 %v421_v54, 1e-24 }
 0x17f   : > { %563 = vrsqrt.f32 %v424_v55 }
 0x180   : > { %v423_v56 = vpop.xlane.xlu0 %422 }
 0x181   : > { %v425_v57 = vmax.f32 %v423_v56, 1e-24 }
 0x183   : > { %565 = vrsqrt.f32 %v425_v57 }
 0x18c   : > { %v564_v58 = vpop.eup %563 }
 0x18d   : > { %v428_v59 = vmul.f32 %v564_v58, %v535_v48 }
 0x18f   : > { %430 = vst [vmem:[%s202_s11] sm:$0xff] %v428_v59 }
 0x190   : > { %v566_v60 = vpop.eup %565 }
 0x191   : > { %v429_v61 = vmul.f32 %v566_v60, %v538_v52 }
 0x193   : > { %431 = vst [vmem:[%s202_s11 + $0x8] sm:$0xff] %v429_v61 }
 0x194 PF: > { %s14_s15 = sadd.s32 1, %s573_s15  }
 0x195   : > { %p11_p4 = scmp.ge.s32.totalorder %s14_s15, 4  }
 0x197   :  { %13 = sbr.rel (!%p11_p4) target bundleno = 1 (0x1), region = 66 }

</bundles_post_ra>
